<compile_context>
chip_gen: v7x
topology: tpu7x:2x2x1
jax: 0.10.0
libtpu: 0.0.40
codegen_flags: <defaults>
</compile_context>

<pallas_src>
import jax
import jax.numpy as jnp
from jax.experimental import pallas as pl
from jax.experimental.pallas import tpu as pltpu


def normalize_safe(w, eps=1e-8):
    # TODO(synk): exact normalizeSafe() source not provided; using safe
    # row-sum normalization (zero rows stay zero), the common convention.
    s = jnp.sum(w, axis=-1, keepdims=True)
    return jnp.where(jnp.abs(s) > eps, w / s, jnp.zeros_like(w))


def _choose_fold_k(n, lane_width, max_k=8):
    """Smallest k so folding k batch rows gives a lane-dense (%128) tile."""
    if lane_width % 128 == 0:
        return 1
    for k in range(2, max_k + 1):
        if (k * lane_width) % 128 == 0 and n % k == 0:
            return k
    return 1


def _build_placement_matrix(weights, C, k):
    """G[(j*3 + t), (b*C + c)] = weights[b, j] * (c == 6 + t), block-diag over k.

    Folds joint->bone mixing and the 'write into columns 6:9' placement into a
    small static matrix so the kernel is one dense, lane-dense matmul.  The
    block-diagonal (kron) version handles k batch rows packed per kernel row."""
    Bn, J = weights.shape
    g4 = jnp.zeros((J, 3, Bn, C), weights.dtype)
    for t in range(3):
        g4 = g4.at[:, t, :, 6 + t].set(weights.T)
    g = g4.reshape(J * 3, Bn * C)
    if k == 1:
        return g
    return jnp.kron(jnp.eye(k, dtype=g.dtype), g)          # [k*J*3, k*Bn*C]


def _choose_block_n(n_rows, row_bytes_tt, row_bytes_total):
    if n_rows <= 8:
        return n_rows
    # ~4 MiB of targetTransforms per tile (amortizes ~0.35us/step grid
    # overhead, >85% of HBM roofline), while keeping the double-buffered
    # per-step working set (jt + tt_in + tt_out, x2) under ~40 MiB so large
    # tiles are safe under v7x's 64 MiB VMEM and the 48 MiB scoped limit.
    by_tt = (4 << 20) // max(row_bytes_tt, 1)
    by_ws = (40 << 20) // max(2 * row_bytes_total, 1)
    # >= 4 grid blocks when N is large enough so the "parallel" axis gives each
    # of v7x's two TensorCores >= 2 steps and pipelining can hide the DMAs.
    by_split = n_rows // 4 if n_rows >= 32 else max(n_rows // 2, 8)
    tn = min(by_split, by_tt, by_ws)
    tn = max(8, (tn // 8) * 8)
    return min(tn, n_rows)


def _post_translation_kernel(g_ref, jt_ref, tt_ref, out_ref):
    # g_ref:  [k*J*3, k*Bn*C] mixing+placement matrix (grid-invariant, 1 buffer)
    # jt_ref: [TN, k*J*3]     flattened joint translations for this batch tile
    # tt_ref: [TN, k*Bn*C]    flattened target transforms (aliased with out_ref)
    delta = jnp.dot(jt_ref[...], g_ref[...],
                    preferred_element_type=jnp.float32)     # [TN, k*Bn*C]
    out_ref[...] = (tt_ref[...].astype(jnp.float32) + delta).astype(out_ref.dtype)


def post_translation(weights, joint_translation, target_transforms, *, block_n=None):
    """weights: [Bn, J]; joint_translation: [N, J, 3]; target_transforms: [N, Bn, C].

    Callers should donate target_transforms (jax.jit(..., donate_argnums=...))
    so the input_output_aliases below survive the jit boundary without XLA
    inserting a defensive full copy of the largest (HBM-bound) array.
    """
    N, J, T = joint_translation.shape
    Nt, Bn, C = target_transforms.shape
    assert T == 3 and Nt == N and C >= 9
    assert weights.shape == (Bn, J)

    # Lane densification: fold k batch rows per kernel row so the output last
    # dim is a multiple of 128 lanes (unmasked stores, full VPU-lane adds).
    k = _choose_fold_k(N, Bn * C)
    rows = N // k

    # Inputs kept f32 for exact parity with the PyTorch module; cast jt/G to
    # bf16 here if a ~10% HBM-read saving is worth the precision loss.
    g = _build_placement_matrix(weights.astype(jnp.float32), C, k)  # tiny, mostly zero
    jt_flat = joint_translation.reshape(rows, k * J * 3)    # free row-major reshape
    tt_flat = target_transforms.reshape(rows, k * Bn * C)   # free row-major reshape

    itemsize = target_transforms.dtype.itemsize
    if block_n is None:
        block_n = _choose_block_n(
            rows,
            k * Bn * C * itemsize,                          # tt bytes / row
            k * (J * 3 + 2 * Bn * C) * itemsize)            # full working set / row
    grid = (pl.cdiv(rows, block_n),)

    out_flat = pl.pallas_call(
        _post_translation_kernel,
        out_shape=jax.ShapeDtypeStruct((rows, k * Bn * C), target_transforms.dtype),
        grid=grid,
        in_specs=[
            # G is grid-invariant: single buffer, no pointless double-buffer.
            pl.BlockSpec((k * J * 3, k * Bn * C), lambda n: (0, 0),
                         pipeline_mode=pl.Buffered(1)),
            pl.BlockSpec((block_n, k * J * 3), lambda n: (n, 0)),
            pl.BlockSpec((block_n, k * Bn * C), lambda n: (n, 0)),
        ],
        out_specs=pl.BlockSpec((block_n, k * Bn * C), lambda n: (n, 0)),
        input_output_aliases={2: 0},   # update targetTransforms in place
        compiler_params=pltpu.CompilerParams(
            dimension_semantics=("parallel",),
            # Above v5e/v6e scoped defaults (16/32 MiB), below v7x's 64 MiB
            # physical VMEM, so large tiles neither OOM nor force tiny tiles.
            vmem_limit_bytes=48 << 20),
    )(g, jt_flat, tt_flat)

    return out_flat.reshape(N, Bn, C)


# Donate targetTransforms so the in-place alias survives the jit boundary.
post_translation_jit = jax.jit(post_translation, donate_argnums=(2,))


if __name__ == "__main__":
    key = jax.random.PRNGKey(0)
    k1, k2, k3, k4 = jax.random.split(key, 4)

    # K verts, J joints, Bn bones, N batch, C transform width (>= 9).
    K, J, Bn, N, C = 24, 16, 8, 16, 12

    # Deterministic synthetic "__init__" parameters (no checkpoint).
    joint_weights = jax.random.uniform(k1, (K, J), jnp.float32)
    bone_weights = jax.random.uniform(k2, (K, Bn), jnp.float32)
    weights = normalize_safe(bone_weights.T @ joint_weights)       # [Bn, J]
    # train_weights=False path: getWeights() just returns the normalized weights.

    joint_translation = jax.random.normal(k3, (N, J, 3), jnp.float32)
    target_transforms = jax.random.normal(k4, (N, Bn, C), jnp.float32)

    # Pure-JAX reference of the PyTorch forward (computed BEFORE donating tt).
    ref = target_transforms.at[..., 6:9].add(
        jnp.einsum("bj,njt->nbt", weights, joint_translation))
    ref = jax.block_until_ready(ref)

    out = post_translation_jit(weights, joint_translation, target_transforms)
    out = jax.block_until_ready(out)

    assert out.shape == (N, Bn, C)
    assert jnp.allclose(out, ref, atol=1e-5, rtol=1e-5), "mismatch vs reference"

    print("KERNEL_OK")
</pallas_src>

<mosaic_0001>
module attributes {stable_mosaic.version = 11 : i64} {
  func.func @_post_translation_kernel(%arg0: i32, %arg1: memref<192x384xf32, #tpu.memory_space<vmem>>, %arg2: memref<4x192xf32, #tpu.memory_space<vmem>>, %arg3: memref<4x384xf32, #tpu.memory_space<vmem>>, %arg4: memref<4x384xf32, #tpu.memory_space<vmem>>) attributes {dimension_semantics = [#tpu.dimension_semantics<parallel>], iteration_bounds = array<i64: 1>, scalar_prefetch = 0 : i64, scratch_operands = 0 : i64, tpu.core_type = #tpu.core_type<tc>, window_params = [{pipeline_mode = #tpu.pipeline_mode<synchronous>, transform_indices = @transform_0, window_bounds = array<i64: 192, 384>}, {transform_indices = @transform_1, window_bounds = array<i64: 4, 192>}, {transform_indices = @transform_2, window_bounds = array<i64: 4, 384>}, {transform_indices = @transform_3, window_bounds = array<i64: 4, 384>}]} {
    %c0 = arith.constant 0 : index
    %c0_0 = arith.constant 0 : index
    %0 = vector.load %arg2[%c0, %c0_0] : memref<4x192xf32, #tpu.memory_space<vmem>>, vector<4x192xf32>
    %c0_1 = arith.constant 0 : index
    %c0_2 = arith.constant 0 : index
    %1 = vector.load %arg1[%c0_1, %c0_2] : memref<192x384xf32, #tpu.memory_space<vmem>>, vector<192x384xf32>
    %cst = arith.constant dense<0.000000e+00> : vector<4x384xf32>
    %2 = tpu.matmul %0, %1, %cst {dimension_numbers = #tpu.dot_dimension_numbers<[1], [0], [0], [1], [0, 0, 1, 1], [], []>} : vector<4x192xf32>, vector<192x384xf32>, vector<4x384xf32> -> vector<4x384xf32>
    %c0_3 = arith.constant 0 : index
    %c0_4 = arith.constant 0 : index
    %3 = vector.load %arg3[%c0_3, %c0_4] : memref<4x384xf32, #tpu.memory_space<vmem>>, vector<4x384xf32>
    %4 = arith.addf %3, %2 : vector<4x384xf32>
    %c0_5 = arith.constant 0 : index
    %c0_6 = arith.constant 0 : index
    %5 = vector.load %arg4[%c0_5, %c0_6] : memref<4x384xf32, #tpu.memory_space<vmem>>, vector<4x384xf32>
    tpu.vector_store %arg4[%c0_5, %c0_6], %4 {strides = array<i32>} : memref<4x384xf32, #tpu.memory_space<vmem>>, vector<4x384xf32>,
    return
  }
  func.func @transform_0(%arg0: i32) -> (i32, i32) {
    %c0_i32 = arith.constant 0 : i32
    %c0_i32_0 = arith.constant 0 : i32
    %c0_i32_1 = arith.constant 0 : i32
    return %c0_i32, %c0_i32_0 : i32, i32
  }
  func.func @transform_1(%arg0: i32) -> (i32, i32) {
    %c0_i32 = arith.constant 0 : i32
    %c0_i32_0 = arith.constant 0 : i32
    return %arg0, %c0_i32 : i32, i32
  }
  func.func @transform_2(%arg0: i32) -> (i32, i32) {
    %c0_i32 = arith.constant 0 : i32
    %c0_i32_0 = arith.constant 0 : i32
    return %arg0, %c0_i32 : i32, i32
  }
  func.func @transform_3(%arg0: i32) -> (i32, i32) {
    %c0_i32 = arith.constant 0 : i32
    %c0_i32_0 = arith.constant 0 : i32
    return %arg0, %c0_i32 : i32, i32
  }
}

</mosaic_0001>

<bundles_post_ra>
// kernel: mul.4
= control target key start
LH: loop header
LB: loop body
LE: loop exit
PB: predicated region body
PF: predicated region fallthrough
CT: control target
= control target key end

     0   :  { %vm4_vm0 = vcmask 1047556   ;;  %s649_s14 = smov 84   ;;  %s650_s18 = smov 72   ;;  %vm6_vm1 = vcmask 97280   ;;  %vm61_vm2 = vcmask 786080   ;;  %vm126_vm3 = vcmask 687680   ;;  %s1188_s0 = inlined_call_operand.vmem [shape: f32[16,3,8,12], index: 0, kind: input, shape index: {}]   ;;  %s1189_s1 = inlined_call_operand.vmem [shape: f32[48,96], index: 1, kind: output, shape index: {}]  }
   0x1   :  { %v528_v0 = vld [vmem:[%s1188_s0 + $0x47] ss:$8 sm:$0xf]   ;;  %v542_v18 = vld [vmem:[%s1188_s0 + $0x106] ss:$8 sm:$0xf]  }
   0x2   :  { %v529_v1 = vld [vmem:[%s1188_s0 + $0x47] ss:$8 sm:$0xf0]   ;;  %v543_v19 = vld [vmem:[%s1188_s0 + $0x106] ss:$8 sm:$0xf0]  }
   0x3   :  { %v79_v2 = vsel %vm4_vm0, %v529_v1, %v528_v0  ;;  %v523_v3 = vld [vmem:[%s1188_s0 + $0x7] ss:$8 sm:$0xf]   ;;  %v540_v20 = vld [vmem:[%s1188_s0 + $0x6] ss:$8 sm:$0xf]   ;;  %v133_v22 = vsel %vm4_vm0, %v543_v19, %v542_v18 }
   0x4   :  { %v524_v4 = vld [vmem:[%s1188_s0 + $0x7] ss:$8 sm:$0xf0]   ;;  %80 = vrot.lane.b32.xlu1 %v79_v2, %s649_s14  ;;  %v541_v21 = vld [vmem:[%s1188_s0 + $0x6] ss:$8 sm:$0xf0]  }
   0x5   :  { %v58_v5 = vsel %vm4_vm0, %v524_v4, %v523_v3  ;;  %v531_v6 = vld [vmem:[%s1188_s0 + $0x147] ss:$8 sm:$0xf]   ;;  %v123_v23 = vsel %vm4_vm0, %v541_v21, %v540_v20  ;;  %v548_v24 = vld [vmem:[%s1188_s0 + $0x146] ss:$8 sm:$0xf]  }
   0x6   :  { %v532_v7 = vld [vmem:[%s1188_s0 + $0x147] ss:$8 sm:$0xf0]   ;;  %59 = vrot.lane.b32.xlu0 %v58_v5, %s649_s14  ;;  %v549_v25 = vld [vmem:[%s1188_s0 + $0x146] ss:$8 sm:$0xf0]  }
   0x7   :  { %v90_v8 = vsel %vm4_vm0, %v532_v7, %v531_v6  ;;  %v525_v9 = vld [vmem:[%s1188_s0 + $0x107] ss:$8 sm:$0xf]   ;;  %v545_v26 = vld [vmem:[%s1188_s0 + $0x46] ss:$8 sm:$0xf]   ;;  %v155_v28 = vsel %vm4_vm0, %v549_v25, %v548_v24 }
   0x8   :  { %v526_v10 = vld [vmem:[%s1188_s0 + $0x107] ss:$8 sm:$0xf0]   ;;  %91 = vrot.lane.b32.xlu1 %v90_v8, %s649_s14  ;;  %v546_v27 = vld [vmem:[%s1188_s0 + $0x46] ss:$8 sm:$0xf0]  }
   0x9   :  { %v68_v11 = vsel %vm4_vm0, %v526_v10, %v525_v9  ;;  %v537_v12 = vld [vmem:[%s1188_s0 + $0xc7] ss:$8 sm:$0xf]   ;;  %v144_v29 = vsel %vm4_vm0, %v546_v27, %v545_v26  ;;  %v554_v30 = vld [vmem:[%s1188_s0 + $0xc6] ss:$8 sm:$0xf]  }
   0xa   :  { %v538_v13 = vld [vmem:[%s1188_s0 + $0xc7] ss:$8 sm:$0xf0]   ;;  %69 = vrot.lane.b32.xlu0 %v68_v11, %s649_s14  ;;  %v555_v31 = vld [vmem:[%s1188_s0 + $0xc6] ss:$8 sm:$0xf0]  }
   0xb   :  { %v534_v14 = vld [vmem:[%s1188_s0 + $0x87] ss:$8 sm:$0xf]   ;;  %v112_v16 = vsel %vm4_vm0, %v538_v13, %v537_v12  ;;  %v551_v32 = vld [vmem:[%s1188_s0 + $0x86] ss:$8 sm:$0xf]   ;;  %v177_v34 = vsel %vm4_vm0, %v555_v31, %v554_v30 }
   0xc   :  { %v535_v15 = vld [vmem:[%s1188_s0 + $0x87] ss:$8 sm:$0xf0]   ;;  %113 = vrot.lane.b32.xlu1 %v112_v16, %s649_s14  ;;  %v552_v33 = vld [vmem:[%s1188_s0 + $0x86] ss:$8 sm:$0xf0]  }
   0xd   :  { %v101_v17 = vsel %vm4_vm0, %v535_v15, %v534_v14  ;;  %v166_v35 = vsel %vm4_vm0, %v552_v33, %v551_v32  ;;  %v559_v36 = vld [vmem:[%s1188_s0 + $0x105] ss:$8 sm:$0xf]   ;;  %v576_v53 = vld [vmem:[%s1188_s0 + $0x104] ss:$8 sm:$0xf]  }
   0xe   :  { %102 = vrot.lane.b32.xlu0 %v101_v17, %s649_s14  ;;  %v560_v37 = vld [vmem:[%s1188_s0 + $0x105] ss:$8 sm:$0xf0]   ;;  %s651_s14 = smov 60   ;;  %s652_s28 = smov 48   ;;  %vm191_vm4 = vcmask 589280  }
   0xf   :  { %v557_v38 = vld [vmem:[%s1188_s0 + $0x5] ss:$8 sm:$0xf]   ;;  %v198_v40 = vsel %vm4_vm0, %v560_v37, %v559_v36  ;;  %v577_v54 = vld [vmem:[%s1188_s0 + $0x104] ss:$8 sm:$0xf0]  }
  0x10   :  { %134 = vrot.lane.b32.xlu1 %v133_v22, %s650_s18  ;;  %v558_v39 = vld [vmem:[%s1188_s0 + $0x5] ss:$8 sm:$0xf0]   ;;  %v574_v56 = vld [vmem:[%s1188_s0 + $0x4] ss:$8 sm:$0xf]   ;;  %v263_v1 = vsel %vm4_vm0, %v577_v54, %v576_v53 }
  0x11   :  { %v188_v41 = vsel %vm4_vm0, %v558_v39, %v557_v38  ;;  %v565_v42 = vld [vmem:[%s1188_s0 + $0x145] ss:$8 sm:$0xf]   ;;  %v575_v57 = vld [vmem:[%s1188_s0 + $0x4] ss:$8 sm:$0xf0]  }
  0x12   :  { %124 = vrot.lane.b32.xlu0 %v123_v23, %s650_s18  ;;  %v566_v43 = vld [vmem:[%s1188_s0 + $0x145] ss:$8 sm:$0xf0]   ;;  %v616_v58 = vld [vmem:[%s1188_s0 + $0x142] ss:$8 sm:$0xf]   ;;  %v253_v7 = vsel %vm4_vm0, %v575_v57, %v574_v56 }
  0x13   :  { %v562_v44 = vld [vmem:[%s1188_s0 + $0x45] ss:$8 sm:$0xf]   ;;  %v220_v46 = vsel %vm4_vm0, %v566_v43, %v565_v42  ;;  %v617_v59 = vld [vmem:[%s1188_s0 + $0x142] ss:$8 sm:$0xf0]  }
  0x14   :  { %156 = vrot.lane.b32.xlu1 %v155_v28, %s650_s18  ;;  %v563_v45 = vld [vmem:[%s1188_s0 + $0x45] ss:$8 sm:$0xf0]   ;;  %v582_v60 = vld [vmem:[%s1188_s0 + $0x144] ss:$8 sm:$0xf]   ;;  %v817_v62 = vsel %vm4_vm0, %v617_v59, %v616_v58 }
  0x15   :  { %v209_v47 = vsel %vm4_vm0, %v563_v45, %v562_v44  ;;  %v571_v48 = vld [vmem:[%s1188_s0 + $0xc5] ss:$8 sm:$0xf]   ;;  %v583_v61 = vld [vmem:[%s1188_s0 + $0x144] ss:$8 sm:$0xf0]  }
  0x16   :  { %145 = vrot.lane.b32.xlu0 %v144_v29, %s650_s18  ;;  %v572_v49 = vld [vmem:[%s1188_s0 + $0xc5] ss:$8 sm:$0xf0]   ;;  %v613_v63 = vld [vmem:[%s1188_s0 + $0x42] ss:$8 sm:$0xf]   ;;  %v285_v17 = vsel %vm4_vm0, %v583_v61, %v582_v60 }
  0x17   :  { %v568_v50 = vld [vmem:[%s1188_s0 + $0x85] ss:$8 sm:$0xf]   ;;  %v242_v52 = vsel %vm4_vm0, %v572_v49, %v571_v48  ;;  %v614_v0 = vld [vmem:[%s1188_s0 + $0x42] ss:$8 sm:$0xf0]  }
  0x18   :  { %178 = vrot.lane.b32.xlu1 %v177_v34, %s650_s18  ;;  %v569_v51 = vld [vmem:[%s1188_s0 + $0x85] ss:$8 sm:$0xf0]   ;;  %v579_v2 = vld [vmem:[%s1188_s0 + $0x44] ss:$8 sm:$0xf]   ;;  %v833_v4 = vsel %vm4_vm0, %v614_v0, %v613_v63 }
  0x19   :  { %v231_v55 = vsel %vm4_vm0, %v569_v51, %v568_v50  ;;  %v580_v3 = vld [vmem:[%s1188_s0 + $0x44] ss:$8 sm:$0xf0]   ;;  %v622_v5 = vld [vmem:[%s1188_s0 + $0xc2] ss:$8 sm:$0xf]  }
  0x1a   :  { %167 = vrot.lane.b32.xlu0 %v166_v35, %s650_s18  ;;  %v623_v6 = vld [vmem:[%s1188_s0 + $0xc2] ss:$8 sm:$0xf0]   ;;  %v627_v12 = vld [vmem:[%s1188_s0 + $0x101] ss:$8 sm:$0xf]   ;;  %v274_v23 = vsel %vm4_vm0, %v580_v3, %v579_v2 }
  0x1b   :  { %v843_v8 = vsel %vm4_vm0, %v623_v6, %v622_v5  ;;  %v619_v9 = vld [vmem:[%s1188_s0 + $0x82] ss:$8 sm:$0xf]   ;;  %v588_v13 = vld [vmem:[%s1188_s0 + $0xc4] ss:$8 sm:$0xf]  }
  0x1c   :  { %199 = vrot.lane.b32.xlu1 %v198_v40, %s651_s14  ;;  %v620_v10 = vld [vmem:[%s1188_s0 + $0x82] ss:$8 sm:$0xf0]   ;;  %v589_v14 = vld [vmem:[%s1188_s0 + $0xc4] ss:$8 sm:$0xf0]  }
  0x1d   :  { %v852_v11 = vsel %vm4_vm0, %v620_v10, %v619_v9  ;;  %v628_v15 = vld [vmem:[%s1188_s0 + $0x101] ss:$8 sm:$0xf0]   ;;  %v585_v18 = vld [vmem:[%s1188_s0 + $0x84] ss:$8 sm:$0xf]   ;;  %v307_v35 = vsel %vm4_vm0, %v589_v14, %v588_v13 }
  0x1e   :  { %189 = vrot.lane.b32.xlu0 %v188_v41, %s651_s14  ;;  %v625_v16 = vld [vmem:[%s1188_s0 + $0x1] ss:$8 sm:$0xf]   ;;  %v586_v19 = vld [vmem:[%s1188_s0 + $0x84] ss:$8 sm:$0xf0]   ;;  %v879_v20 = vsel %vm4_vm0, %v628_v15, %v627_v12 }
  0x1f   :  { %v626_v21 = vld [vmem:[%s1188_s0 + $0x1] ss:$8 sm:$0xf0]   ;;  %v593_v30 = vld [vmem:[%s1188_s0 + $0x103] ss:$8 sm:$0xf]   ;;  %v296_v41 = vsel %vm4_vm0, %v586_v19, %v585_v18 }
  0x20   :  { %221 = vrot.lane.b32.xlu1 %v220_v46, %s651_s14  ;;  %v633_v22 = vld [vmem:[%s1188_s0 + $0x141] ss:$8 sm:$0xf]   ;;  %v889_v24 = vsel %vm4_vm0, %v626_v21, %v625_v16  ;;  %v594_v31 = vld [vmem:[%s1188_s0 + $0x103] ss:$8 sm:$0xf0]  }
  0x21   :  { %v634_v25 = vld [vmem:[%s1188_s0 + $0x141] ss:$8 sm:$0xf0]   ;;  %v591_v36 = vld [vmem:[%s1188_s0 + $0x3] ss:$8 sm:$0xf]   ;;  %v328_v53 = vsel %vm4_vm0, %v594_v31, %v593_v30 }
  0x22   :  { %210 = vrot.lane.b32.xlu0 %v209_v47, %s651_s14  ;;  %v630_v26 = vld [vmem:[%s1188_s0 + $0x41] ss:$8 sm:$0xf]   ;;  %v898_v27 = vsel %vm4_vm0, %v634_v25, %v633_v22  ;;  %v592_v37 = vld [vmem:[%s1188_s0 + $0x3] ss:$8 sm:$0xf0]  }
  0x23   :  { %v631_v28 = vld [vmem:[%s1188_s0 + $0x41] ss:$8 sm:$0xf0]   ;;  %v508_v40 = vld [vmem:[%s1188_s0 + $0x40] ss:$8 sm:$0xf]   ;;  %v318_v58 = vsel %vm4_vm0, %v592_v37, %v591_v36 }
  0x24   :  { %243 = vrot.lane.b32.xlu1 %v242_v52, %s651_s14  ;;  %v639_v29 = vld [vmem:[%s1188_s0 + $0xc1] ss:$8 sm:$0xf]   ;;  %v914_v32 = vsel %vm4_vm0, %v631_v28, %v630_v26  ;;  %v509_v43 = vld [vmem:[%s1188_s0 + $0x40] ss:$8 sm:$0xf0]  }
  0x25   :  { %v640_v33 = vld [vmem:[%s1188_s0 + $0xc1] ss:$8 sm:$0xf0]   ;;  %v2_v44 = vld [vmem:[%s1188_s0] ss:$8 sm:$0xf]   ;;  %v13_v45 = vsel %vm4_vm0, %v509_v43, %v508_v40 }
  0x26   :  { %232 = vrot.lane.b32.xlu0 %v231_v55, %s651_s14  ;;  %v636_v34 = vld [vmem:[%s1188_s0 + $0x81] ss:$8 sm:$0xf]   ;;  %v931_v38 = vsel %vm4_vm0, %v640_v33, %v639_v29  ;;  %v3_v46 = vld [vmem:[%s1188_s0] ss:$8 sm:$0xf0]  }
  0x27   :  { %v637_v39 = vld [vmem:[%s1188_s0 + $0x81] ss:$8 sm:$0xf0]   ;;  %v520_v47 = vld [vmem:[%s1188_s0 + $0x140] ss:$8 sm:$0xf]   ;;  %v5_v50 = vsel %vm4_vm0, %v3_v46, %v2_v44 }
  0x28   :  { %264 = vrot.lane.b32.xlu1 %v263_v1, %s652_s28  ;;  %v941_v42 = vsel %vm4_vm0, %v637_v39, %v636_v34  ;;  %v599_v48 = vld [vmem:[%s1188_s0 + $0x143] ss:$8 sm:$0xf]   ;;  %510 = vst.msk [vmem:[%s1189_s1 + $0x8] sm:$0xff] %vm6_vm1, %v13_v45   ;;  %7 = vst.msk [vmem:[%s1189_s1] sm:$0xff] %vm6_vm1, %v5_v50   ;;  %s653_s21 = smov 36  }
  0x29   :  { %v600_v49 = vld [vmem:[%s1188_s0 + $0x143] ss:$8 sm:$0xf0]   ;;  %v521_v51 = vld [vmem:[%s1188_s0 + $0x140] ss:$8 sm:$0xf0]  }
  0x2a   :  { %254 = vrot.lane.b32.xlu0 %v253_v7, %s652_s28  ;;  %v517_v52 = vld [vmem:[%s1188_s0 + $0x100] ss:$8 sm:$0xf]   ;;  %v596_v54 = vld [vmem:[%s1188_s0 + $0x43] ss:$8 sm:$0xf]   ;;  %v49_v55 = vsel %vm4_vm0, %v521_v51, %v520_v47  ;;  %v350_v3 = vsel %vm4_vm0, %v600_v49, %v599_v48 }
  0x2b   :  { %v518_v56 = vld [vmem:[%s1188_s0 + $0x100] ss:$8 sm:$0xf0]   ;;  %522 = vst.msk [vmem:[%s1189_s1 + $0x28] sm:$0xff] %vm6_vm1, %v49_v55   ;;  %s655_s13 = smov 12   ;;  %vm256_vm5 = vcmask 490880  }
  0x2c   :  { %286 = vrot.lane.b32.xlu1 %v285_v17, %s652_s28  ;;  %v514_v57 = vld [vmem:[%s1188_s0 + $0xc0] ss:$8 sm:$0xf]   ;;  %v40_v59 = vsel %vm4_vm0, %v518_v56, %v517_v52  ;;  %v597_v63 = vld [vmem:[%s1188_s0 + $0x43] ss:$8 sm:$0xf0]  }
  0x2d   :  { %v515_v60 = vld [vmem:[%s1188_s0 + $0xc0] ss:$8 sm:$0xf0]   ;;  %519 = vst.msk [vmem:[%s1189_s1 + $0x20] sm:$0xff] %vm6_vm1, %v40_v59   ;;  %v339_v5 = vsel %vm4_vm0, %v597_v63, %v596_v54  ;;  %vm321_vm6 = vcmask 392480   ;;  %vm386_vm7 = vcmask 294080  }
  0x2e   :  { %275 = vrot.lane.b32.xlu0 %v274_v23, %s652_s28  ;;  %v511_v61 = vld [vmem:[%s1188_s0 + $0x80] ss:$8 sm:$0xf]   ;;  %v31_v0 = vsel %vm4_vm0, %v515_v60, %v514_v57  ;;  %v605_v6 = vld [vmem:[%s1188_s0 + $0xc3] ss:$8 sm:$0xf]  }
  0x2f   :  { %v512_v1 = vld [vmem:[%s1188_s0 + $0x80] ss:$8 sm:$0xf0]   ;;  %516 = vst.msk [vmem:[%s1189_s1 + $0x18] sm:$0xff] %vm6_vm1, %v31_v0   ;;  %vm451_vm8 = vcmask 195680  }
  0x30   :  { %308 = vrot.lane.b32.xlu1 %v307_v35, %s652_s28  ;;  %v22_v2 = vsel %vm4_vm0, %v512_v1, %v511_v61  ;;  %v606_v7 = vld [vmem:[%s1188_s0 + $0xc3] ss:$8 sm:$0xf0]   ;;  %v610_v14 = vld [vmem:[%s1188_s0 + $0x102] ss:$8 sm:$0xf]  }
  0x31   :  { %513 = vst.msk [vmem:[%s1189_s1 + $0x10] sm:$0xff] %vm6_vm1, %v22_v2   ;;  %v602_v9 = vld [vmem:[%s1188_s0 + $0x83] ss:$8 sm:$0xf]   ;;  %v372_v12 = vsel %vm4_vm0, %v606_v7, %v605_v6 }
  0x32   :  { %297 = vrot.lane.b32.xlu0 %v296_v41, %s652_s28  ;;  %v603_v10 = vld [vmem:[%s1188_s0 + $0x83] ss:$8 sm:$0xf0]   ;;  %v611_v15 = vld [vmem:[%s1188_s0 + $0x102] ss:$8 sm:$0xf0]  }
  0x33   :  { %v361_v13 = vsel %vm4_vm0, %v603_v10, %v602_v9  ;;  %v608_v16 = vld [vmem:[%s1188_s0 + $0x2] ss:$8 sm:$0xf]   ;;  %v393_v18 = vsel %vm4_vm0, %v611_v15, %v610_v14 }
  0x34   :  { %329 = vrot.lane.b32.xlu1 %v328_v53, %s653_s21  ;;  %v609_v17 = vld [vmem:[%s1188_s0 + $0x2] ss:$8 sm:$0xf0]   ;;  %s654_s0 = smov 24  }
  0x35   :  { %v383_v19 = vsel %vm4_vm0, %v609_v17, %v608_v16 }
  0x36   :  { %319 = vrot.lane.b32.xlu0 %v318_v58, %s653_s21 }
  0x38   :  { %351 = vrot.lane.b32.xlu1 %v350_v3, %s653_s21 }
  0x3a   :  { %340 = vrot.lane.b32.xlu0 %v339_v5, %s653_s21 }
  0x3c   :  { %373 = vrot.lane.b32.xlu1 %v372_v12, %s653_s21 }
  0x3e   :  { %362 = vrot.lane.b32.xlu0 %v361_v13, %s653_s21 }
  0x40   :  { %394 = vrot.lane.b32.xlu1 %v393_v18, %s654_s0 }
  0x42   :  { %384 = vrot.lane.b32.xlu0 %v383_v19, %s654_s0 }
  0x44   :  { %416 = vrot.lane.b32.xlu1 %v817_v62, %s654_s0 }
  0x46   :  { %405 = vrot.lane.b32.xlu0 %v833_v4, %s654_s0 }
  0x48   :  { %438 = vrot.lane.b32.xlu1 %v843_v8, %s654_s0 }
  0x4a   :  { %427 = vrot.lane.b32.xlu0 %v852_v11, %s654_s0 }
  0x4c   :  { %459 = vrot.lane.b32.xlu1 %v879_v20, %s655_s13 }
  0x4e   :  { %449 = vrot.lane.b32.xlu0 %v889_v24, %s655_s13 }
  0x50   :  { %481 = vrot.lane.b32.xlu1 %v898_v27, %s655_s13 }
  0x52   :  { %470 = vrot.lane.b32.xlu0 %v914_v32, %s655_s13 }
  0x54   :  { %503 = vrot.lane.b32.xlu1 %v931_v38, %s655_s13 }
  0x56   :  { %492 = vrot.lane.b32.xlu0 %v941_v42, %s655_s13 }
  0x76   :  { %v81_v62 = vpop.permute.xlu1 %80  }
  0x77   :  { %530 = vst.msk [vmem:[%s1189_s1 + $0x8] sm:$0xff] %vm61_vm2, %v81_v62  }
  0x78   :  { %v60_v4 = vpop.permute.xlu0 %59  }
  0x79   :  { %62 = vst.msk [vmem:[%s1189_s1] sm:$0xff] %vm61_vm2, %v60_v4  }
  0x7a   :  { %v92_v8 = vpop.permute.xlu1 %91  }
  0x7b   :  { %533 = vst.msk [vmem:[%s1189_s1 + $0x28] sm:$0xff] %vm61_vm2, %v92_v8  }
  0x7c   :  { %v70_v11 = vpop.permute.xlu0 %69  }
  0x7d   :  { %527 = vst.msk [vmem:[%s1189_s1 + $0x20] sm:$0xff] %vm61_vm2, %v70_v11  }
  0x7e   :  { %v114_v20 = vpop.permute.xlu1 %113  }
  0x7f   :  { %539 = vst.msk [vmem:[%s1189_s1 + $0x18] sm:$0xff] %vm61_vm2, %v114_v20  }
  0x80   :  { %v103_v21 = vpop.permute.xlu0 %102  }
  0x81   :  { %536 = vst.msk [vmem:[%s1189_s1 + $0x10] sm:$0xff] %vm61_vm2, %v103_v21  }
  0x82   :  { %v135_v22 = vpop.permute.xlu1 %134  }
  0x83   :  { %544 = vst.msk [vmem:[%s1189_s1 + $0x20] sm:$0xff] %vm126_vm3, %v135_v22  }
  0x84   :  { %v125_v23 = vpop.permute.xlu0 %124  }
  0x85   :  { %127 = vst.msk [vmem:[%s1189_s1] sm:$0xff] %vm126_vm3, %v125_v23  }
  0x86   :  { %v157_v24 = vpop.permute.xlu1 %156  }
  0x87   :  { %550 = vst.msk [vmem:[%s1189_s1 + $0x28] sm:$0xff] %vm126_vm3, %v157_v24  }
  0x88   :  { %v146_v25 = vpop.permute.xlu0 %145  }
  0x89   :  { %547 = vst.msk [vmem:[%s1189_s1 + $0x8] sm:$0xff] %vm126_vm3, %v146_v25  }
  0x8a   :  { %v179_v26 = vpop.permute.xlu1 %178  }
  0x8b   :  { %556 = vst.msk [vmem:[%s1189_s1 + $0x18] sm:$0xff] %vm126_vm3, %v179_v26  }
  0x8c   :  { %v168_v27 = vpop.permute.xlu0 %167  }
  0x8d   :  { %553 = vst.msk [vmem:[%s1189_s1 + $0x10] sm:$0xff] %vm126_vm3, %v168_v27  }
  0x8e   :  { %v200_v28 = vpop.permute.xlu1 %199  }
  0x8f   :  { %561 = vst.msk [vmem:[%s1189_s1 + $0x20] sm:$0xff] %vm191_vm4, %v200_v28  }
  0x90   :  { %v190_v29 = vpop.permute.xlu0 %189  }
  0x91   :  { %192 = vst.msk [vmem:[%s1189_s1] sm:$0xff] %vm191_vm4, %v190_v29  }
  0x92   :  { %v222_v30 = vpop.permute.xlu1 %221  }
  0x93   :  { %567 = vst.msk [vmem:[%s1189_s1 + $0x28] sm:$0xff] %vm191_vm4, %v222_v30  }
  0x94   :  { %v211_v31 = vpop.permute.xlu0 %210  }
  0x95   :  { %564 = vst.msk [vmem:[%s1189_s1 + $0x8] sm:$0xff] %vm191_vm4, %v211_v31  }
  0x96   :  { %v244_v32 = vpop.permute.xlu1 %243  }
  0x97   :  { %573 = vst.msk [vmem:[%s1189_s1 + $0x18] sm:$0xff] %vm191_vm4, %v244_v32  }
  0x98   :  { %v233_v33 = vpop.permute.xlu0 %232  }
  0x99   :  { %570 = vst.msk [vmem:[%s1189_s1 + $0x10] sm:$0xff] %vm191_vm4, %v233_v33  }
  0x9a   :  { %v265_v34 = vpop.permute.xlu1 %264  }
  0x9b   :  { %578 = vst.msk [vmem:[%s1189_s1 + $0x20] sm:$0xff] %vm256_vm5, %v265_v34  }
  0x9c   :  { %v255_v35 = vpop.permute.xlu0 %254  }
  0x9d   :  { %257 = vst.msk [vmem:[%s1189_s1] sm:$0xff] %vm256_vm5, %v255_v35  }
  0x9e   :  { %v287_v36 = vpop.permute.xlu1 %286  }
  0x9f   :  { %584 = vst.msk [vmem:[%s1189_s1 + $0x28] sm:$0xff] %vm256_vm5, %v287_v36  }
  0xa0   :  { %v276_v37 = vpop.permute.xlu0 %275  }
  0xa1   :  { %581 = vst.msk [vmem:[%s1189_s1 + $0x8] sm:$0xff] %vm256_vm5, %v276_v37  }
  0xa2   :  { %v309_v38 = vpop.permute.xlu1 %308  }
  0xa3   :  { %590 = vst.msk [vmem:[%s1189_s1 + $0x18] sm:$0xff] %vm256_vm5, %v309_v38  }
  0xa4   :  { %v298_v39 = vpop.permute.xlu0 %297  }
  0xa5   :  { %587 = vst.msk [vmem:[%s1189_s1 + $0x10] sm:$0xff] %vm256_vm5, %v298_v39  }
  0xa6   :  { %v330_v40 = vpop.permute.xlu1 %329  }
  0xa7   :  { %595 = vst.msk [vmem:[%s1189_s1 + $0x20] sm:$0xff] %vm321_vm6, %v330_v40  }
  0xa8   :  { %v320_v41 = vpop.permute.xlu0 %319  }
  0xa9   :  { %322 = vst.msk [vmem:[%s1189_s1] sm:$0xff] %vm321_vm6, %v320_v41  }
  0xaa   :  { %v352_v42 = vpop.permute.xlu1 %351  }
  0xab   :  { %601 = vst.msk [vmem:[%s1189_s1 + $0x28] sm:$0xff] %vm321_vm6, %v352_v42  }
  0xac   :  { %v341_v43 = vpop.permute.xlu0 %340  }
  0xad   :  { %598 = vst.msk [vmem:[%s1189_s1 + $0x8] sm:$0xff] %vm321_vm6, %v341_v43  }
  0xae   :  { %v374_v44 = vpop.permute.xlu1 %373  }
  0xaf   :  { %607 = vst.msk [vmem:[%s1189_s1 + $0x18] sm:$0xff] %vm321_vm6, %v374_v44  }
  0xb0   :  { %v363_v45 = vpop.permute.xlu0 %362  }
  0xb1   :  { %604 = vst.msk [vmem:[%s1189_s1 + $0x10] sm:$0xff] %vm321_vm6, %v363_v45  }
  0xb2   :  { %v395_v46 = vpop.permute.xlu1 %394  }
  0xb3   :  { %612 = vst.msk [vmem:[%s1189_s1 + $0x20] sm:$0xff] %vm386_vm7, %v395_v46  }
  0xb4   :  { %v385_v47 = vpop.permute.xlu0 %384  }
  0xb5   :  { %387 = vst.msk [vmem:[%s1189_s1] sm:$0xff] %vm386_vm7, %v385_v47  }
  0xb6   :  { %v417_v48 = vpop.permute.xlu1 %416  }
  0xb7   :  { %618 = vst.msk [vmem:[%s1189_s1 + $0x28] sm:$0xff] %vm386_vm7, %v417_v48  }
  0xb8   :  { %v406_v49 = vpop.permute.xlu0 %405  }
  0xb9   :  { %615 = vst.msk [vmem:[%s1189_s1 + $0x8] sm:$0xff] %vm386_vm7, %v406_v49  }
  0xba   :  { %v439_v50 = vpop.permute.xlu1 %438  }
  0xbb   :  { %624 = vst.msk [vmem:[%s1189_s1 + $0x18] sm:$0xff] %vm386_vm7, %v439_v50  }
  0xbc   :  { %v428_v51 = vpop.permute.xlu0 %427  }
  0xbd   :  { %621 = vst.msk [vmem:[%s1189_s1 + $0x10] sm:$0xff] %vm386_vm7, %v428_v51  }
  0xbe   :  { %v460_v52 = vpop.permute.xlu1 %459  }
  0xbf   :  { %629 = vst.msk [vmem:[%s1189_s1 + $0x20] sm:$0xff] %vm451_vm8, %v460_v52  }
  0xc0   :  { %v450_v53 = vpop.permute.xlu0 %449  }
  0xc1   :  { %452 = vst.msk [vmem:[%s1189_s1] sm:$0xff] %vm451_vm8, %v450_v53  }
  0xc2   :  { %v482_v54 = vpop.permute.xlu1 %481  }
  0xc3   :  { %635 = vst.msk [vmem:[%s1189_s1 + $0x28] sm:$0xff] %vm451_vm8, %v482_v54  }
  0xc4   :  { %v471_v55 = vpop.permute.xlu0 %470  }
  0xc5   :  { %632 = vst.msk [vmem:[%s1189_s1 + $0x8] sm:$0xff] %vm451_vm8, %v471_v55  }
  0xc6   :  { %v504_v56 = vpop.permute.xlu1 %503  }
  0xc7   :  { %641 = vst.msk [vmem:[%s1189_s1 + $0x18] sm:$0xff] %vm451_vm8, %v504_v56  }
  0xc8   :  { %v493_v57 = vpop.permute.xlu0 %492  }
  0xc9   :  { %638 = vst.msk [vmem:[%s1189_s1 + $0x10] sm:$0xff] %vm451_vm8, %v493_v57  }

// kernel: post_translation.1
= control target key start
LH: loop header
LB: loop body
LE: loop exit
PB: predicated region body
PF: predicated region fallthrough
CT: control target
= control target key end

     0   :  { %v335_v3 = vmov 0.0|0.0   ;;  %vm89_vm0 = vcmask 523264   ;;  %s607_s0 = inlined_call_operand.vmem [shape: f32[192,384], index: 0, kind: input, shape index: {}]   ;;  %s608_s1 = inlined_call_operand.vmem [shape: f32[4,192], index: 1, kind: input, shape index: {}]   ;;  %s609_s2 = inlined_call_operand.vmem [shape: f32[4,384], index: 2, kind: input, shape index: {}, may-alias: {2,3}]   ;;  %s610_s3 = inlined_call_operand.vmem [shape: f32[4,384], index: 3, kind: output, shape index: {}, may-alias: {2,3}]  }
   0x1   :  { %v16_v0 = vld [vmem:[%s607_s0 + $0x8] sm:$0xff]  ;;  %v19_v1 = vld [vmem:[%s607_s0 + $0x20] sm:$0xff]  ;;  %297 = vmatprep.subr.bf16.mxu1 %v335_v3  ;;  %v18_v5 = vld [vmem:[%s607_s0 + $0x18] sm:$0xff] }
   0x2   :  { %v15_v2 = vld [vmem:[%s607_s0] sm:$0xff]  ;;  %v249_v4 = vpack.c.bf16 %v19_v1, %v16_v0  ;;  %v17_v6 = vld [vmem:[%s607_s0 + $0x10] sm:$0xff]  ;;  %v20_v7 = vld [vmem:[%s607_s0 + $0x28] sm:$0xff] }
   0x3   :  { %v251_v8 = vpack.c.bf16 %v18_v5, %v15_v2  ;;  %v298_v9 = vpack.c.bf16 %v20_v7, %v17_v6  ;;  %v22_v10 = vld [vmem:[%s607_s0 + $0x38] sm:$0xff]  ;;  %v25_v11 = vld [vmem:[%s607_s0 + $0x50] sm:$0xff]  ;;  %v24_v14 = vld [vmem:[%s607_s0 + $0x48] sm:$0xff] }
   0x4   :  { %v21_v12 = vld [vmem:[%s607_s0 + $0x30] sm:$0xff]  ;;  %250 = vmatprep.subr.bf16.mxu0 %v249_v4  ;;  %v253_v13 = vpack.c.bf16 %v25_v11, %v22_v10  ;;  %v23_v15 = vld [vmem:[%s607_s0 + $0x40] sm:$0xff]  ;;  %v26_v16 = vld [vmem:[%s607_s0 + $0x58] sm:$0xff] }
   0x5   :  { %252 = vmatpush1.bf16.msra.mxu0 %v251_v8  ;;  %299 = vmatpush1.bf16.msra.mxu1 %v298_v9  ;;  %v255_v17 = vpack.c.bf16 %v24_v14, %v21_v12  ;;  %v301_v18 = vpack.c.bf16 %v26_v16, %v23_v15  ;;  %v28_v19 = vld [vmem:[%s607_s0 + $0x68] sm:$0xff]  ;;  %v31_v20 = vld [vmem:[%s607_s0 + $0x80] sm:$0xff]  ;;  %v30_v23 = vld [vmem:[%s607_s0 + $0x78] sm:$0xff] }
   0x6   :  { %v27_v21 = vld [vmem:[%s607_s0 + $0x60] sm:$0xff]  ;;  %254 = vmatprep.subr.bf16.mxu0 %v253_v13  ;;  %300 = vmatprep.subr.bf16.mxu1 %v335_v3  ;;  %v257_v22 = vpack.c.bf16 %v31_v20, %v28_v19  ;;  %v29_v24 = vld [vmem:[%s607_s0 + $0x70] sm:$0xff]  ;;  %v32_v25 = vld [vmem:[%s607_s0 + $0x88] sm:$0xff] }
   0x7   :  { %v34_v26 = vld [vmem:[%s607_s0 + $0x98] sm:$0xff]  ;;  %v37_v27 = vld [vmem:[%s607_s0 + $0xb0] sm:$0xff]  ;;  %v259_v28 = vpack.c.bf16 %v30_v23, %v27_v21  ;;  %v304_v29 = vpack.c.bf16 %v32_v25, %v29_v24  ;;  %v36_v32 = vld [vmem:[%s607_s0 + $0xa8] sm:$0xff] }
   0x8   :  { %v33_v30 = vld [vmem:[%s607_s0 + $0x90] sm:$0xff]  ;;  %v261_v31 = vpack.c.bf16 %v37_v27, %v34_v26  ;;  %v35_v33 = vld [vmem:[%s607_s0 + $0xa0] sm:$0xff]  ;;  %v38_v34 = vld [vmem:[%s607_s0 + $0xb8] sm:$0xff] }
   0x9   :  { %256 = vmatpush1.bf16.msra.mxu0 %v255_v17  ;;  %302 = vmatpush1.bf16.msra.mxu1 %v301_v18  ;;  %v40_v35 = vld [vmem:[%s607_s0 + $0xc8] sm:$0xff]  ;;  %v43_v36 = vld [vmem:[%s607_s0 + $0xe0] sm:$0xff]  ;;  %v263_v37 = vpack.c.bf16 %v36_v32, %v33_v30  ;;  %v307_v38 = vpack.c.bf16 %v38_v34, %v35_v33  ;;  %v42_v41 = vld [vmem:[%s607_s0 + $0xd8] sm:$0xff] }
   0xa   :  { %258 = vmatprep.subr.bf16.mxu0 %v257_v22  ;;  %303 = vmatprep.subr.bf16.mxu1 %v335_v3  ;;  %v39_v39 = vld [vmem:[%s607_s0 + $0xc0] sm:$0xff]  ;;  %v265_v40 = vpack.c.bf16 %v43_v36, %v40_v35  ;;  %v41_v42 = vld [vmem:[%s607_s0 + $0xd0] sm:$0xff]  ;;  %v44_v43 = vld [vmem:[%s607_s0 + $0xe8] sm:$0xff] }
   0xb   :  { %v46_v44 = vld [vmem:[%s607_s0 + $0xf8] sm:$0xff]  ;;  %v49_v45 = vld [vmem:[%s607_s0 + $0x110] sm:$0xff]  ;;  %v267_v46 = vpack.c.bf16 %v42_v41, %v39_v39  ;;  %v310_v47 = vpack.c.bf16 %v44_v43, %v41_v42  ;;  %v48_v50 = vld [vmem:[%s607_s0 + $0x108] sm:$0xff] }
   0xc   :  { %v45_v48 = vld [vmem:[%s607_s0 + $0xf0] sm:$0xff]  ;;  %v269_v49 = vpack.c.bf16 %v49_v45, %v46_v44  ;;  %v47_v51 = vld [vmem:[%s607_s0 + $0x100] sm:$0xff]  ;;  %v50_v52 = vld [vmem:[%s607_s0 + $0x118] sm:$0xff] }
   0xd   :  { %260 = vmatpush1.bf16.msra.mxu0 %v259_v28  ;;  %305 = vmatpush1.bf16.msra.mxu1 %v304_v29  ;;  %v52_v53 = vld [vmem:[%s607_s0 + $0x128] sm:$0xff]  ;;  %v55_v54 = vld [vmem:[%s607_s0 + $0x140] sm:$0xff]  ;;  %v271_v55 = vpack.c.bf16 %v48_v50, %v45_v48  ;;  %v313_v56 = vpack.c.bf16 %v50_v52, %v47_v51  ;;  %v54_v59 = vld [vmem:[%s607_s0 + $0x138] sm:$0xff] }
   0xe   :  { %262 = vmatprep.subr.bf16.mxu0 %v261_v31  ;;  %306 = vmatprep.subr.bf16.mxu1 %v335_v3  ;;  %v51_v57 = vld [vmem:[%s607_s0 + $0x120] sm:$0xff]  ;;  %v273_v58 = vpack.c.bf16 %v55_v54, %v52_v53  ;;  %v53_v60 = vld [vmem:[%s607_s0 + $0x130] sm:$0xff]  ;;  %v56_v61 = vld [vmem:[%s607_s0 + $0x148] sm:$0xff] }
   0xf   :  { %v58_v62 = vld [vmem:[%s607_s0 + $0x158] sm:$0xff]  ;;  %v61_v63 = vld [vmem:[%s607_s0 + $0x170] sm:$0xff]  ;;  %v497_v0 = vld [vmem:[%s608_s1] sm:$0xff]  ;;  %v275_v1 = vpack.c.bf16 %v54_v59, %v51_v57  ;;  %v316_v2 = vpack.c.bf16 %v56_v61, %v53_v60 }
  0x10   :  { %v57_v4 = vld [vmem:[%s607_s0 + $0x150] sm:$0xff]  ;;  %v88_v5 = vcombine.high %v497_v0, %v497_v0  ;;  %v277_v6 = vpack.c.bf16 %v61_v63, %v58_v62  ;;  %v60_v7 = vld [vmem:[%s607_s0 + $0x168] sm:$0xff]  ;;  %v59_v8 = vld [vmem:[%s607_s0 + $0x160] sm:$0xff] }
  0x11   :  { %264 = vmatpush1.bf16.msra.mxu0 %v263_v37  ;;  %308 = vmatpush1.bf16.msra.mxu1 %v307_v38  ;;  %v62_v9 = vld [vmem:[%s607_s0 + $0x178] sm:$0xff]  ;;  %v64_v10 = vld [vmem:[%s607_s0 + $0x188] sm:$0xff]  ;;  %v67_v11 = vld [vmem:[%s607_s0 + $0x1a0] sm:$0xff]  ;;  %v279_v12 = vpack.c.bf16 %v60_v7, %v57_v4 }
  0x12   :  { %266 = vmatprep.subr.bf16.mxu0 %v265_v40  ;;  %309 = vmatprep.subr.bf16.mxu1 %v335_v3  ;;  %v319_v13 = vpack.c.bf16 %v62_v9, %v59_v8  ;;  %v63_v14 = vld [vmem:[%s607_s0 + $0x180] sm:$0xff]  ;;  %v281_v15 = vpack.c.bf16 %v67_v11, %v64_v10  ;;  %v66_v16 = vld [vmem:[%s607_s0 + $0x198] sm:$0xff]  ;;  %v65_v17 = vld [vmem:[%s607_s0 + $0x190] sm:$0xff] }
  0x13   :  { %247 = vmatprep.mubr.msk.f32.mxu0 %vm89_vm0, %v88_v5  ;;  %248 = vmatprep.mubr.msk.f32.mxu1 %vm89_vm0, %v88_v5  ;;  %v68_v18 = vld [vmem:[%s607_s0 + $0x1a8] sm:$0xff]  ;;  %v70_v19 = vld [vmem:[%s607_s0 + $0x1b8] sm:$0xff]  ;;  %v73_v20 = vld [vmem:[%s607_s0 + $0x1d0] sm:$0xff]  ;;  %v283_v21 = vpack.c.bf16 %v66_v16, %v63_v14 }
  0x14   :  { %v322_v22 = vpack.c.bf16 %v68_v18, %v65_v17  ;;  %v69_v23 = vld [vmem:[%s607_s0 + $0x1b0] sm:$0xff]  ;;  %v285_v24 = vpack.c.bf16 %v73_v20, %v70_v19  ;;  %v72_v25 = vld [vmem:[%s607_s0 + $0x1c8] sm:$0xff]  ;;  %v71_v26 = vld [vmem:[%s607_s0 + $0x1c0] sm:$0xff] }
  0x15   :  { %268 = vmatpush1.bf16.msra.mxu0 %v267_v46  ;;  %311 = vmatpush1.bf16.msra.mxu1 %v310_v47  ;;  %v74_v27 = vld [vmem:[%s607_s0 + $0x1d8] sm:$0xff]  ;;  %v76_v28 = vld [vmem:[%s607_s0 + $0x1e8] sm:$0xff]  ;;  %v79_v29 = vld [vmem:[%s607_s0 + $0x200] sm:$0xff]  ;;  %v287_v30 = vpack.c.bf16 %v72_v25, %v69_v23 }
  0x16   :  { %270 = vmatprep.subr.bf16.mxu0 %v269_v49  ;;  %312 = vmatprep.subr.bf16.mxu1 %v335_v3  ;;  %v325_v31 = vpack.c.bf16 %v74_v27, %v71_v26  ;;  %v75_v32 = vld [vmem:[%s607_s0 + $0x1e0] sm:$0xff]  ;;  %v289_v33 = vpack.c.bf16 %v79_v29, %v76_v28  ;;  %v78_v34 = vld [vmem:[%s607_s0 + $0x1f8] sm:$0xff]  ;;  %v77_v35 = vld [vmem:[%s607_s0 + $0x1f0] sm:$0xff] }
  0x17   :  { %v80_v36 = vld [vmem:[%s607_s0 + $0x208] sm:$0xff]  ;;  %v82_v37 = vld [vmem:[%s607_s0 + $0x218] sm:$0xff]  ;;  %v85_v38 = vld [vmem:[%s607_s0 + $0x230] sm:$0xff]  ;;  %v291_v39 = vpack.c.bf16 %v78_v34, %v75_v32 }
  0x18   :  { %v328_v40 = vpack.c.bf16 %v80_v36, %v77_v35  ;;  %v81_v41 = vld [vmem:[%s607_s0 + $0x210] sm:$0xff]  ;;  %v293_v42 = vpack.c.bf16 %v85_v38, %v82_v37  ;;  %v84_v43 = vld [vmem:[%s607_s0 + $0x228] sm:$0xff]  ;;  %v83_v44 = vld [vmem:[%s607_s0 + $0x220] sm:$0xff] }
  0x19   :  { %272 = vmatpush1.bf16.msra.mxu0 %v271_v55  ;;  %314 = vmatpush1.bf16.msra.mxu1 %v313_v56  ;;  %v86_v45 = vld [vmem:[%s607_s0 + $0x238] sm:$0xff]  ;;  %v295_v46 = vpack.c.bf16 %v84_v43, %v81_v41  ;;  %v234_v48 = vld [vmem:[%s609_s2 + $0x8] sm:$0xf]  ;;  %v233_v52 = vld [vmem:[%s609_s2] sm:$0xff] }
  0x1a   :  { %274 = vmatprep.subr.bf16.mxu0 %v273_v58  ;;  %315 = vmatprep.subr.bf16.mxu1 %v335_v3  ;;  %v331_v47 = vpack.c.bf16 %v86_v45, %v83_v44 }
  0x1d   :  { %276 = vmatpush1.bf16.msra.mxu0 %v275_v1  ;;  %317 = vmatpush1.bf16.msra.mxu1 %v316_v2 }
  0x1e   :  { %278 = vmatprep.subr.bf16.mxu0 %v277_v6  ;;  %318 = vmatprep.subr.bf16.mxu1 %v335_v3 }
  0x21   :  { %280 = vmatpush1.bf16.msra.mxu0 %v279_v12  ;;  %320 = vmatpush1.bf16.msra.mxu1 %v319_v13 }
  0x22   :  { %282 = vmatprep.subr.bf16.mxu0 %v281_v15  ;;  %321 = vmatprep.subr.bf16.mxu1 %v335_v3 }
  0x25   :  { %284 = vmatpush1.bf16.msra.mxu0 %v283_v21  ;;  %323 = vmatpush1.bf16.msra.mxu1 %v322_v22 }
  0x26   :  { %286 = vmatprep.subr.bf16.mxu0 %v285_v24  ;;  %324 = vmatprep.subr.bf16.mxu1 %v335_v3 }
  0x29   :  { %288 = vmatpush1.bf16.msra.mxu0 %v287_v30  ;;  %326 = vmatpush1.bf16.msra.mxu1 %v325_v31 }
  0x2a   :  { %290 = vmatprep.subr.bf16.mxu0 %v289_v33  ;;  %327 = vmatprep.subr.bf16.mxu1 %v335_v3 }
  0x2d   :  { %292 = vmatpush1.bf16.msra.mxu0 %v291_v39  ;;  %329 = vmatpush1.bf16.msra.mxu1 %v328_v40 }
  0x2e   :  { %294 = vmatprep.subr.bf16.mxu0 %v293_v42  ;;  %330 = vmatprep.subr.bf16.mxu1 %v335_v3 }
  0x31   :  { %296 = vmatpush1.bf16.msra.mxu0 %v295_v46  ;;  %332 = vmatpush1.bf16.msra.mxu1 %v331_v47 }
  0x34   :  { %157 = vmatmul.mubr.f32.vlgmr.msra.gmra.mrb[0].mxu0 %v497_v0  ;;  %228 = vmatmul.mubr.f32.vlgmr.msra.gmra.mrb[0].mxu1 %v497_v0 }
 0x107   :  { %v158_v49 = vpop.f32.mrb[0].mxu0  ;;  %v229_v50 = vpop.f32.mrb[0].mxu1 }
 0x108   :  { %v160_v51 = vpop.f32.mrb[1].mxu0  ;;  %v240_v53 = vadd.f32 %v234_v48, %v229_v50  ;;  %v231_v54 = vpop.f32.mrb[1].mxu1 }
 0x109   :  { %v237_v3 = vcombine.low %v158_v49, %v160_v51 }
 0x10a   :  { %242 = vst [vmem:[%s610_s3 + $0x8] sm:$0xf] %v240_v53 }
 0x10b   :  { %v239_v55 = vadd.f32 %v237_v3, %v233_v52 }
 0x10d   :  { %241 = vst [vmem:[%s610_s3] sm:$0xff] %v239_v55 }

</bundles_post_ra>
